<compile_context>
chip_gen: v7x
topology: tpu7x:2x2x1
jax: 0.10.0
libtpu: 0.0.40
codegen_flags: <defaults>
</compile_context>

<pallas_src>
import jax
import jax.numpy as jnp
import numpy as np
from jax.experimental import pallas as pl
from jax.experimental.pallas import tpu as pltpu


def _round_up(x, m):
    return ((x + m - 1) // m) * m


def _choose_tile(batch, tile_b):
    """Balanced batch tile.

    >= 2 grid steps once the batch is big enough to split usefully
    (>= 128 rows/step keeps the MXU M-occupied), so ("parallel",) grid
    semantics can use both v7x TensorCores; otherwise a single full-array
    block (legal for any batch size, including non-multiples of 8).
    """
    min_steps = 2 if batch >= 256 else 1
    steps = max(min_steps, pl.cdiv(batch, tile_b))
    if steps == 1:
        return batch                       # full-array block, any B
    return _round_up(pl.cdiv(batch, steps), 8)


def critic_kernel(x_ref, w1_ref, b1_ref, w2_ref, b2_ref, w3_ref, b3_ref, o_ref):
    # fc1 (+ReLU): one MXU matmul over the pre-concatenated [state | action].
    x = x_ref[...].astype(jnp.bfloat16)                              # (tb, K)
    h1 = jnp.dot(x, w1_ref[...], preferred_element_type=jnp.float32)
    h1 = jnp.maximum(h1 + b1_ref[...], 0.0)                          # f32 VPU

    # fc2 (+ReLU)
    h2 = jnp.dot(h1.astype(jnp.bfloat16), w2_ref[...],
                 preferred_element_type=jnp.float32)
    h2 = jnp.maximum(h2 + b2_ref[...], 0.0)                          # (tb, fc2)

    # q head (fc2 -> 1): contract over features with the batch landing on the
    # LANE axis:  q = w3 (1, fc2) x h2^T (fc2, tb) -> (1, tb).  The store
    # below is then a dense lane-major write instead of a (tb, 1) masked
    # 1-lane store.
    w3 = w3_ref[...].astype(jnp.float32)                             # (1, fc2)
    q = jax.lax.dot_general(w3, h2, (((1,), (1,)), ((), ())),
                            preferred_element_type=jnp.float32)      # (1, tb)
    o_ref[...] = (q + b3_ref[0, 0]).astype(o_ref.dtype).reshape(o_ref.shape)


def critic_forward(state, action, params, *, tile_b=512):
    """state: (B, input_dims) f32, action: (B, n_actions) f32 -> (B, 1) f32.

    tile_b: max batch rows per grid step.  256 already saturates v5e's
    4x128^2 MXU; 512 keeps the 256-wide v6e/v7x MXU fully M-occupied.
    VMEM use is ~2 MiB either way (non-issue on all generations).
    """
    w1, b1, w2, b2, w3, b3 = params
    B = state.shape[0]
    K = w1.shape[0]                      # input_dims + n_actions
    fc1_dims = w1.shape[1]
    fc2_dims = w2.shape[1]

    # fc1 over the concat is a single matmul; the concat itself is one tiny
    # (B, K) copy done once in the wrapper.
    x = jnp.concatenate([state, action], axis=1)
    assert x.shape[1] == K

    tb = _choose_tile(B, tile_b)
    grid = pl.cdiv(B, tb)                # ragged last block: no input padding

    # Constant index_map -> fetched once, VMEM-resident across the batch grid.
    resident = lambda shape: pl.BlockSpec(shape, lambda i: (0, 0))

    out = pl.pallas_call(
        critic_kernel,
        out_shape=jax.ShapeDtypeStruct((grid, 1, tb), jnp.float32),
        grid=(grid,),
        in_specs=[
            pl.BlockSpec((tb, K), lambda i: (i, 0)),            # x tile (streamed)
            resident((K, fc1_dims)),                            # W1 (bf16)
            resident((1, fc1_dims)),                            # b1 (f32)
            resident((fc1_dims, fc2_dims)),                     # W2 (bf16)
            resident((1, fc2_dims)),                            # b2 (f32)
            resident((1, fc2_dims)),                            # W3 row (bf16)
            pl.BlockSpec(memory_space=pltpu.MemorySpace.SMEM),  # b3 scalar
        ],
        out_specs=pl.BlockSpec((1, 1, tb), lambda i: (i, 0, 0)),
        compiler_params=pltpu.CompilerParams(
            dimension_semantics=("parallel",)),
    )(x, w1, b1, w2, b2, w3, b3)

    # (grid, 1, tb) lane-major -> (grid*tb, 1); drop the ragged-tail rows.
    return out.reshape(grid * tb, 1)[:B]


def init_params(key, input_dims, n_actions, fc1_dims=256, fc2_dims=256):
    """PyTorch nn.Linear-style init (U[-1/sqrt(fan_in), 1/sqrt(fan_in)]).
    Weights stored pre-transposed to (in, out); matmul weights in bf16."""
    ks = jax.random.split(key, 6)

    def linear(kw, kb, fan_in, fan_out):
        bound = 1.0 / np.sqrt(fan_in)
        w = jax.random.uniform(kw, (fan_in, fan_out), jnp.float32, -bound, bound)
        b = jax.random.uniform(kb, (1, fan_out), jnp.float32, -bound, bound)
        return w, b

    w1, b1 = linear(ks[0], ks[1], input_dims + n_actions, fc1_dims)
    w2, b2 = linear(ks[2], ks[3], fc1_dims, fc2_dims)
    w3, b3 = linear(ks[4], ks[5], fc2_dims, 1)
    return (w1.astype(jnp.bfloat16), b1,
            w2.astype(jnp.bfloat16), b2,
            w3.T.astype(jnp.bfloat16),     # (1, fc2_dims) row
            b3.reshape(1, 1))              # scalar bias -> SMEM


def critic_reference(state, action, params):
    """Plain-JAX reference with the same bf16 casting as the kernel."""
    w1, b1, w2, b2, w3, b3 = params
    x = jnp.concatenate([state, action], axis=1).astype(jnp.bfloat16)
    h1 = jnp.maximum(jnp.dot(x, w1, preferred_element_type=jnp.float32) + b1, 0.0)
    h2 = jnp.maximum(jnp.dot(h1.astype(jnp.bfloat16), w2,
                             preferred_element_type=jnp.float32) + b2, 0.0)
    return jnp.sum(h2 * w3.astype(jnp.float32), axis=-1, keepdims=True) + b3[0, 0]


if __name__ == "__main__":
    key = jax.random.PRNGKey(0)
    input_dims, n_actions = 8, 2
    params = init_params(jax.random.fold_in(key, 1), input_dims, n_actions)

    # batch=5  : single ragged full-array block (B < 8)
    # batch=8  : single aligned block
    # batch=260: 2 balanced tiles of 136 (ragged last block, megacore split)
    for batch in (5, 8, 260):
        ks, ka = jax.random.split(jax.random.fold_in(key, 100 + batch))
        state = jax.random.normal(ks, (batch, input_dims), jnp.float32)
        action = jax.random.normal(ka, (batch, n_actions), jnp.float32)

        q = jax.block_until_ready(critic_forward(state, action, params))
        ref = critic_reference(state, action, params)
        assert q.shape == (batch, 1)
        err = float(jnp.max(jnp.abs(q - ref)))
        assert jnp.allclose(q, ref, atol=5e-3, rtol=5e-3), err

    print("KERNEL_OK")
</pallas_src>

<mosaic_0001>
module attributes {stable_mosaic.version = 11 : i64} {
  func.func @critic_kernel(%arg0: i32, %arg1: memref<5x10xf32, #tpu.memory_space<vmem>>, %arg2: memref<10x256xbf16, #tpu.memory_space<vmem>>, %arg3: memref<1x256xf32, #tpu.memory_space<vmem>>, %arg4: memref<256x256xbf16, #tpu.memory_space<vmem>>, %arg5: memref<1x256xf32, #tpu.memory_space<vmem>>, %arg6: memref<1x256xbf16, #tpu.memory_space<vmem>>, %arg7: memref<1x1xf32, #tpu.memory_space<smem>>, %arg8: memref<1x1x5xf32, #tpu.memory_space<vmem>>) attributes {dimension_semantics = [#tpu.dimension_semantics<parallel>], iteration_bounds = array<i64: 1>, scalar_prefetch = 0 : i64, scratch_operands = 0 : i64, tpu.core_type = #tpu.core_type<tc>, window_params = [{transform_indices = @transform_0, window_bounds = array<i64: 5, 10>}, {pipeline_mode = #tpu.pipeline_mode<synchronous>, transform_indices = @transform_1, window_bounds = array<i64: 10, 256>}, {pipeline_mode = #tpu.pipeline_mode<synchronous>, transform_indices = @transform_2, window_bounds = array<i64: 1, 256>}, {pipeline_mode = #tpu.pipeline_mode<synchronous>, transform_indices = @transform_3, window_bounds = array<i64: 256, 256>}, {pipeline_mode = #tpu.pipeline_mode<synchronous>, transform_indices = @transform_4, window_bounds = array<i64: 1, 256>}, {pipeline_mode = #tpu.pipeline_mode<synchronous>, transform_indices = @transform_5, window_bounds = array<i64: 1, 256>}, {transform_indices = @transform_6, window_bounds = array<i64: 1, 1>}, {transform_indices = @transform_7, window_bounds = array<i64: 1, 1, 5>}]} {
    %c0 = arith.constant 0 : index
    %c0_0 = arith.constant 0 : index
    %0 = vector.load %arg1[%c0, %c0_0] : memref<5x10xf32, #tpu.memory_space<vmem>>, vector<5x10xf32>
    %1 = arith.truncf %0 : vector<5x10xf32> to vector<5x10xbf16>
    %c0_1 = arith.constant 0 : index
    %c0_2 = arith.constant 0 : index
    %2 = vector.load %arg2[%c0_1, %c0_2] : memref<10x256xbf16, #tpu.memory_space<vmem>>, vector<10x256xbf16>
    %cst = arith.constant dense<0.000000e+00> : vector<5x256xf32>
    %3 = tpu.matmul %1, %2, %cst {dimension_numbers = #tpu.dot_dimension_numbers<[1], [0], [0], [1], [0, 0, 1, 1], [], []>} : vector<5x10xbf16>, vector<10x256xbf16>, vector<5x256xf32> -> vector<5x256xf32>
    %c0_3 = arith.constant 0 : index
    %c0_4 = arith.constant 0 : index
    %4 = vector.load %arg3[%c0_3, %c0_4] : memref<1x256xf32, #tpu.memory_space<vmem>>, vector<1x256xf32>
    %5 = vector.broadcast %4 : vector<1x256xf32> to vector<5x256xf32>
    %6 = arith.addf %3, %5 : vector<5x256xf32>
    %cst_5 = arith.constant 0.000000e+00 : f32
    %7 = vector.broadcast %cst_5 : f32 to vector<5x256xf32>
    %8 = arith.maximumf %6, %7 : vector<5x256xf32>
    %9 = arith.truncf %8 : vector<5x256xf32> to vector<5x256xbf16>
    %c0_6 = arith.constant 0 : index
    %c0_7 = arith.constant 0 : index
    %10 = vector.load %arg4[%c0_6, %c0_7] : memref<256x256xbf16, #tpu.memory_space<vmem>>, vector<256x256xbf16>
    %cst_8 = arith.constant dense<0.000000e+00> : vector<5x256xf32>
    %11 = tpu.matmul %9, %10, %cst_8 {dimension_numbers = #tpu.dot_dimension_numbers<[1], [0], [0], [1], [0, 0, 1, 1], [], []>} : vector<5x256xbf16>, vector<256x256xbf16>, vector<5x256xf32> -> vector<5x256xf32>
    %c0_9 = arith.constant 0 : index
    %c0_10 = arith.constant 0 : index
    %12 = vector.load %arg5[%c0_9, %c0_10] : memref<1x256xf32, #tpu.memory_space<vmem>>, vector<1x256xf32>
    %13 = vector.broadcast %12 : vector<1x256xf32> to vector<5x256xf32>
    %14 = arith.addf %11, %13 : vector<5x256xf32>
    %cst_11 = arith.constant 0.000000e+00 : f32
    %15 = vector.broadcast %cst_11 : f32 to vector<5x256xf32>
    %16 = arith.maximumf %14, %15 : vector<5x256xf32>
    %c0_12 = arith.constant 0 : index
    %c0_13 = arith.constant 0 : index
    %17 = vector.load %arg6[%c0_12, %c0_13] : memref<1x256xbf16, #tpu.memory_space<vmem>>, vector<1x256xbf16>
    %18 = arith.extf %17 : vector<1x256xbf16> to vector<1x256xf32>
    %cst_14 = arith.constant dense<0.000000e+00> : vector<1x5xf32>
    %19 = tpu.matmul %18, %16, %cst_14 {dimension_numbers = #tpu.dot_dimension_numbers<[1], [1], [0], [0], [0, 0, 1, 0], [], []>} : vector<1x256xf32>, vector<5x256xf32>, vector<1x5xf32> -> vector<1x5xf32>
    %c0_15 = arith.constant 0 : index
    %c0_16 = arith.constant 0 : index
    %20 = memref.load %arg7[%c0_15, %c0_16] : memref<1x1xf32, #tpu.memory_space<smem>>
    %21 = vector.broadcast %20 : f32 to vector<1x5xf32>
    %22 = arith.addf %19, %21 : vector<1x5xf32>
    %23 = vector.shape_cast %22 : vector<1x5xf32> to vector<1x1x5xf32>
    %c0_17 = arith.constant 0 : index
    %c0_18 = arith.constant 0 : index
    %c0_19 = arith.constant 0 : index
    %24 = vector.load %arg8[%c0_17, %c0_18, %c0_19] : memref<1x1x5xf32, #tpu.memory_space<vmem>>, vector<1x1x5xf32>
    tpu.vector_store %arg8[%c0_17, %c0_18, %c0_19], %23 {strides = array<i32>} : memref<1x1x5xf32, #tpu.memory_space<vmem>>, vector<1x1x5xf32>,
    return
  }
  func.func @transform_0(%arg0: i32) -> (i32, i32) {
    %c0_i32 = arith.constant 0 : i32
    %c0_i32_0 = arith.constant 0 : i32
    return %arg0, %c0_i32 : i32, i32
  }
  func.func @transform_1(%arg0: i32) -> (i32, i32) {
    %c0_i32 = arith.constant 0 : i32
    %c0_i32_0 = arith.constant 0 : i32
    %c0_i32_1 = arith.constant 0 : i32
    return %c0_i32, %c0_i32_0 : i32, i32
  }
  func.func @transform_2(%arg0: i32) -> (i32, i32) {
    %c0_i32 = arith.constant 0 : i32
    %c0_i32_0 = arith.constant 0 : i32
    %c0_i32_1 = arith.constant 0 : i32
    return %c0_i32, %c0_i32_0 : i32, i32
  }
  func.func @transform_3(%arg0: i32) -> (i32, i32) {
    %c0_i32 = arith.constant 0 : i32
    %c0_i32_0 = arith.constant 0 : i32
    %c0_i32_1 = arith.constant 0 : i32
    return %c0_i32, %c0_i32_0 : i32, i32
  }
  func.func @transform_4(%arg0: i32) -> (i32, i32) {
    %c0_i32 = arith.constant 0 : i32
    %c0_i32_0 = arith.constant 0 : i32
    %c0_i32_1 = arith.constant 0 : i32
    return %c0_i32, %c0_i32_0 : i32, i32
  }
  func.func @transform_5(%arg0: i32) -> (i32, i32) {
    %c0_i32 = arith.constant 0 : i32
    %c0_i32_0 = arith.constant 0 : i32
    %c0_i32_1 = arith.constant 0 : i32
    return %c0_i32, %c0_i32_0 : i32, i32
  }
  func.func @transform_6(%arg0: i32) -> (i32, i32) {
    %c0_i32 = arith.constant 0 : i32
    %c0_i32_0 = arith.constant 0 : i32
    %c0_i32_1 = arith.constant 0 : i32
    return %c0_i32, %c0_i32_0 : i32, i32
  }
  func.func @transform_7(%arg0: i32) -> (i32, i32, i32) {
    %c0_i32 = arith.constant 0 : i32
    %c0_i32_0 = arith.constant 0 : i32
    %c0_i32_1 = arith.constant 0 : i32
    return %arg0, %c0_i32, %c0_i32_0 : i32, i32, i32
  }
}

</mosaic_0001>

<bundles_post_ra>
// kernel: tpu_custom_call.1
= control target key start
LH: loop header
LB: loop body
LE: loop exit
PB: predicated region body
PF: predicated region fallthrough
CT: control target
= control target key end

     0   :  { %13 = vsyncpa [#allocation4], 0  ;;  %s799_s0 = inlined_call_operand.hbm [shape: f32[5,10], index: 0, kind: input, shape index: {}]   ;;  %s800_s1 = inlined_call_operand.hbm [shape: bf16[10,256], index: 1, kind: input, shape index: {}]   ;;  %s801_s2 = inlined_call_operand.vmem [shape: f32[1,256], index: 2, kind: input, shape index: {}]   ;;  %s802_s3 = inlined_call_operand.hbm [shape: bf16[256,256], index: 3, kind: input, shape index: {}]   ;;  %s803_s4 = inlined_call_operand.vmem [shape: f32[1,256], index: 4, kind: input, shape index: {}]   ;;  %s804_s5 = inlined_call_operand.vmem [shape: bf16[1,256], index: 5, kind: input, shape index: {}]   ;;  %s805_s6 = inlined_call_operand.<no memory space> [shape: f32[1,1], index: 6, kind: input, shape index: {}]   ;;  %s806_s7 = inlined_call_operand.hbm [shape: f32[1,1,5], index: 7, kind: output, shape index: {}]  }
   0x1   :  { %14 = vsyncpa [#allocation7], 0 }
   0x2   :  { %15 = vsyncpa [#allocation5], 0  ;;  %s686_s24 = smov [#allocation6]   ;;  %s592_s28 = scalar_lea.hbm %s800_s1, 256 }
   0x3   :  { %s31_s25 = sshll.u32 %s686_s24, 4  ;;  %p593_p0 = scmp.ne.s32.totalorder %s800_s1, %s592_s28  ;;  %s32_s25 = int_to_ptr.vmem [resolvable:$true] %s31_s25 }
   0x4   :  { %p596_p1 = scmp.lt.u32.totalorder %s592_s28, %s800_s1 }
   0x6   :  { %p598_p2 = pnand %p596_p1, %p593_p0 }
   0x8   :  { %601 = shalt.err (!%p598_p2)
}
   0x9   :  { %s602_s10 = scalar_lea.vmem %s32_s25, 256  ;;  %p607_p4 = scmp.lt.s32.totalorder %s32_s25, %s32_s25 }
   0xa   :  { %p603_p3 = scmp.ne.s32.totalorder %s32_s25, %s602_s10  ;;  %p608_p5 = scmp.lt.s32.totalorder %s602_s10, %s602_s10 }
   0xc   :  { %p609_p6 = por %p608_p5, %p607_p4 }
   0xe   :  { %p610_p7 = pnand %p609_p6, %p603_p3 }
  0x10   :  { %613 = shalt.err (!%p610_p7)
}
  0x11   :  { %s687_s11 = smov 128   ;;  %s688_s12 = smov 8  }
  0x12   :  { %37 = dma.hbm_to_vmem [thread:$0]  %s800_s1, 256, %s32_s25, [#allocation7], %s687_s11, %s687_s11, %s688_s12  }
  0x13   :  { %s689_s15 = smov [#allocation3]   ;;  %s690_s17 = smov [#allocation8]  }
  0x14   :  { %s22_s16 = sshll.u32 %s689_s15, 4  ;;  %s45_s18 = sshll.u32 %s690_s17, 4  ;;  %s23_s16 = int_to_ptr.vmem [resolvable:$true] %s22_s16  ;;  %s46_s18 = int_to_ptr.vmem [resolvable:$true] %s45_s18 }
  0x15   :  { %s614_s21 = scalar_lea.hbm %s799_s0, 128 }
  0x16   :  { %p615_p8 = scmp.ne.s32.totalorder %s799_s0, %s614_s21  ;;  %p618_p9 = scmp.lt.u32.totalorder %s614_s21, %s799_s0 }
  0x18   :  { %p620_p10 = pnand %p618_p9, %p615_p8 }
  0x1a   :  { %623 = shalt.err (!%p620_p10)
}
  0x1b   :  { %s624_s1 = scalar_lea.vmem %s23_s16, 128  ;;  %p629_p12 = scmp.lt.s32.totalorder %s23_s16, %s23_s16 }
  0x1c   :  { %p625_p11 = scmp.ne.s32.totalorder %s23_s16, %s624_s1  ;;  %p630_p13 = scmp.lt.s32.totalorder %s624_s1, %s624_s1 }
  0x1e   :  { %p631_p0 = por %p630_p13, %p629_p12 }
  0x20   :  { %p632_p1 = pnand %p631_p0, %p625_p11 }
  0x22   :  { %635 = shalt.err (!%p632_p1)
}
  0x23   :  { %25 = dma.hbm_to_vmem [thread:$0]  %s799_s0, 128, %s23_s16, [#allocation4]  }
  0x24   :  { %s636_s30 = scalar_lea.hbm %s802_s3, 4096 }
  0x25   :  { %p637_p2 = scmp.ne.s32.totalorder %s802_s3, %s636_s30  ;;  %p640_p3 = scmp.lt.u32.totalorder %s636_s30, %s802_s3 }
  0x27   :  { %p642_p4 = pnand %p640_p3, %p637_p2 }
  0x29   :  { %645 = shalt.err (!%p642_p4)
}
  0x2a   :  { %s646_s14 = scalar_lea.vmem %s46_s18, 4096  ;;  %p651_p6 = scmp.lt.s32.totalorder %s46_s18, %s46_s18 }
  0x2b   :  { %p647_p5 = scmp.ne.s32.totalorder %s46_s18, %s646_s14  ;;  %p652_p7 = scmp.lt.s32.totalorder %s646_s14, %s646_s14 }
  0x2d   :  { %p653_p8 = por %p652_p7, %p651_p6 }
  0x2f   :  { %p654_p9 = pnand %p653_p8, %p647_p5 }
  0x31   :  { %657 = shalt.err (!%p654_p9)
}
  0x32   :  { %51 = dma.hbm_to_vmem [thread:$0]  %s802_s3, 4096, %s46_s18, [#allocation7], %s687_s11, %s687_s11, %s688_s12  }
  0x33   :  { %680 = dma.done.wait [#allocation4], 128  }
  0x34   :  { %681 = vsyncadd [#allocation4], 4294967168 }
  0x35   :  { %682 = dma.done.wait [#allocation7], 4352  }
  0x36   :  { %683 = vsyncadd [#allocation7], 4294962944  ;;  %v691_v0 = vmov 0   ;;  %vm96_vm0 = vcmask 1044480   ;;  %v68_v3 = vld [vmem:[#allocation3] sm:$0x1f]  ;;  %v74_v38 = vlaneseq }
  0x37   :  { %135 = vmatprep.mubr.bf16.mxu0 %v691_v0  ;;  %v541_v1 = vld [vmem:[#allocation6 + $0x4] ss:$8 sps:$4 sm:$0x1f]   ;;  %v543_v2 = vld [vmem:[#allocation6] ss:$8 sps:$4 sm:$0x1f]   ;;  %v69_v7 = vpack.c.bf16 %v68_v3, %v68_v3 }
  0x38   :  { %500 = vmatprep.subr.msk.bf16.mxu0 %vm96_vm0, %v541_v1  ;;  %v544_v4 = vld [vmem:[#allocation8 + $0x4] ss:$8 sps:$4 sm:$0xff]   ;;  %v546_v5 = vld [vmem:[#allocation8] ss:$8 sps:$4 sm:$0xff]   ;;  %v98_v6 = vsel %vm96_vm0, %v543_v2, 0  ;;  %vm92_vm1 = vcmask 80896  }
  0x39   :  { %v547_v8 = vld [vmem:[#allocation8 + $0x14] ss:$8 sps:$4 sm:$0xff]   ;;  %104 = vmatpush1.bf16.msra.mxu0 %v98_v6  ;;  %352 = vmatprep.subr.bf16.mxu1 %v544_v4  ;;  %v549_v9 = vld [vmem:[#allocation8 + $0x10] ss:$8 sps:$4 sm:$0xff]   ;;  %v550_v10 = vld [vmem:[#allocation8 + $0x24] ss:$8 sps:$4 sm:$0xff]  }
  0x3a   :  { %353 = vmatpush1.bf16.msra.mxu1 %v546_v5  ;;  %v552_v11 = vld [vmem:[#allocation8 + $0x20] ss:$8 sps:$4 sm:$0xff]   ;;  %v553_v12 = vld [vmem:[#allocation8 + $0x34] ss:$8 sps:$4 sm:$0xff]   ;;  %v555_v13 = vld [vmem:[#allocation8 + $0x30] ss:$8 sps:$4 sm:$0xff]  }
  0x3b   :  { %354 = vmatprep.subr.bf16.mxu1 %v547_v8  ;;  %v556_v14 = vld [vmem:[#allocation8 + $0x44] ss:$8 sps:$4 sm:$0xff]   ;;  %v558_v15 = vld [vmem:[#allocation8 + $0x40] ss:$8 sps:$4 sm:$0xff]   ;;  %v559_v16 = vld [vmem:[#allocation8 + $0x54] ss:$8 sps:$4 sm:$0xff]  }
  0x3c   :  { %501 = vmatmul.mubr.msk.bf16.vlgmr.msra.gmra.mrb[0].mxu0 %vm92_vm1, %v69_v7  ;;  %v561_v17 = vld [vmem:[#allocation8 + $0x50] ss:$8 sps:$4 sm:$0xff]   ;;  %v562_v18 = vld [vmem:[#allocation8 + $0x64] ss:$8 sps:$4 sm:$0xff]   ;;  %v564_v19 = vld [vmem:[#allocation8 + $0x60] ss:$8 sps:$4 sm:$0xff]   ;;  %v398_v7 = vstv %s805_s6 }
  0x3d   :  { %v565_v20 = vld [vmem:[#allocation8 + $0x74] ss:$8 sps:$4 sm:$0xff]   ;;  %v567_v21 = vld [vmem:[#allocation8 + $0x70] ss:$8 sps:$4 sm:$0xff]   ;;  %v568_v22 = vld [vmem:[#allocation8 + $0x84] ss:$8 sps:$4 sm:$0xff]  }
  0x3e   :  { %355 = vmatpush1.bf16.msra.mxu1 %v549_v9  ;;  %v570_v23 = vld [vmem:[#allocation8 + $0x80] ss:$8 sps:$4 sm:$0xff]   ;;  %v571_v24 = vld [vmem:[#allocation8 + $0x94] ss:$8 sps:$4 sm:$0xff]   ;;  %v573_v25 = vld [vmem:[#allocation8 + $0x90] ss:$8 sps:$4 sm:$0xff]  }
  0x3f   :  { %356 = vmatprep.subr.bf16.mxu1 %v550_v10  ;;  %v574_v26 = vld [vmem:[#allocation8 + $0xa4] ss:$8 sps:$4 sm:$0xff]   ;;  %v576_v27 = vld [vmem:[#allocation8 + $0xa0] ss:$8 sps:$4 sm:$0xff]   ;;  %v577_v28 = vld [vmem:[#allocation8 + $0xb4] ss:$8 sps:$4 sm:$0xff]  }
  0x40   :  { %v579_v29 = vld [vmem:[#allocation8 + $0xb0] ss:$8 sps:$4 sm:$0xff]   ;;  %v580_v30 = vld [vmem:[#allocation8 + $0xc4] ss:$8 sps:$4 sm:$0xff]   ;;  %v582_v31 = vld [vmem:[#allocation8 + $0xc0] ss:$8 sps:$4 sm:$0xff]  }
  0x41   :  { %v583_v32 = vld [vmem:[#allocation8 + $0xd4] ss:$8 sps:$4 sm:$0xff]   ;;  %v585_v33 = vld [vmem:[#allocation8 + $0xd0] ss:$8 sps:$4 sm:$0xff]   ;;  %v586_v34 = vld [vmem:[#allocation8 + $0xe4] ss:$8 sps:$4 sm:$0xff]  }
  0x42   :  { %357 = vmatpush1.bf16.msra.mxu1 %v552_v11  ;;  %v588_v35 = vld [vmem:[#allocation8 + $0xe0] ss:$8 sps:$4 sm:$0xff]   ;;  %v589_v36 = vld [vmem:[#allocation8 + $0xf4] ss:$8 sps:$4 sm:$0xff]   ;;  %v591_v37 = vld [vmem:[#allocation8 + $0xf0] ss:$8 sps:$4 sm:$0xff]  }
  0x43   :  { %358 = vmatprep.subr.bf16.mxu1 %v553_v12  ;;  %v75_v39 = vshrl.u32 %v74_v38, 7  ;;  %v72_v41 = vld [vmem:[%s801_s2] sm:$0x3]  ;;  %s692_s19 = smov [#allocation9]   ;;  %vm480_vm2 = vcmask 32768  }
  0x44   :  { %v395_v55 = vld [vmem:[%s804_s5] sm:$0x3] }
  0x45   :  { %v76_v40 = vsub.s32 0, %v75_v39  ;;  %v80_v42 = vsub.s32 1, %v75_v39  ;;  %v396_v56 = vunpack.c.l.bf16 %v395_v55  ;;  %v406_v57 = vsub.s32 2, %v75_v39  ;;  %v180_v59 = vld [vmem:[%s803_s4] sm:$0x3]  ;;  %s488_s4 = sshll.u32 %s692_s19, 4  ;;  %s489_s4 = int_to_ptr.vmem [resolvable:$true] %s488_s4 }
  0x46   :  { %359 = vmatpush1.bf16.msra.mxu1 %v555_v13  ;;  %s658_s20 = scalar_lea.vmem %s489_s4, 16  ;;  %s662_s21 = scalar_lea.vmem %s489_s4, 32 }
  0x47   :  { %360 = vmatprep.subr.bf16.mxu1 %v556_v14  ;;  %v77_v43 = vrot.slane %v72_v41, %v76_v40  ;;  %v81_v44 = vrot.slane %v72_v41, %v80_v42  ;;  %v407_v58 = vrot.slane %v396_v56, %v406_v57  ;;  %v185_v60 = vrot.slane %v180_v59, %v76_v40  ;;  %p659_p10 = scmp.ne.s32.totalorder %s489_s4, %s658_s20  ;;  %p663_p11 = scmp.lt.s32.totalorder %s489_s4, %s489_s4 }
  0x48   :  { %v189_v61 = vrot.slane %v180_v59, %v80_v42  ;;  %v403_v6 = vrot.slane %v396_v56, %v76_v40  ;;  %p664_p12 = scmp.lt.s32.totalorder %s662_s21, %s658_s20 }
  0x49   :  { %474 = vmatprep.mubr.f32.mxu0 %v407_v58 }
  0x4a   :  { %361 = vmatpush1.bf16.msra.mxu1 %v558_v15  ;;  %p665_p13 = por %p664_p12, %p663_p11 }
  0x4b   :  { %362 = vmatprep.subr.bf16.mxu1 %v559_v16 }
  0x4c   :  { %p666_p0 = pnand %p665_p13, %p659_p10 }
  0x4e   :  { %363 = vmatpush1.bf16.msra.mxu1 %v561_v17 }
  0x4f   :  { %364 = vmatprep.subr.bf16.mxu1 %v562_v18 }
  0x52   :  { %365 = vmatpush1.bf16.msra.mxu1 %v564_v19 }
  0x53   :  { %366 = vmatprep.subr.bf16.mxu1 %v565_v20 }
  0x56   :  { %367 = vmatpush1.bf16.msra.mxu1 %v567_v21 }
  0x57   :  { %368 = vmatprep.subr.bf16.mxu1 %v568_v22 }
  0x5a   :  { %369 = vmatpush1.bf16.msra.mxu1 %v570_v23 }
  0x5b   :  { %370 = vmatprep.subr.bf16.mxu1 %v571_v24 }
  0x5e   :  { %371 = vmatpush1.bf16.msra.mxu1 %v573_v25 }
  0x5f   :  { %372 = vmatprep.subr.bf16.mxu1 %v574_v26 }
  0x62   :  { %373 = vmatpush1.bf16.msra.mxu1 %v576_v27 }
  0x63   :  { %374 = vmatprep.subr.bf16.mxu1 %v577_v28 }
  0x66   :  { %375 = vmatpush1.bf16.msra.mxu1 %v579_v29 }
  0x67   :  { %376 = vmatprep.subr.bf16.mxu1 %v580_v30 }
  0x6a   :  { %377 = vmatpush1.bf16.msra.mxu1 %v582_v31 }
  0x6b   :  { %378 = vmatprep.subr.bf16.mxu1 %v583_v32 }
  0x6e   :  { %379 = vmatpush1.bf16.msra.mxu1 %v585_v33 }
  0x6f   :  { %380 = vmatprep.subr.bf16.mxu1 %v586_v34 }
  0x72   :  { %381 = vmatpush1.bf16.msra.mxu1 %v588_v35 }
  0x73   :  { %382 = vmatprep.subr.bf16.mxu1 %v589_v36 }
  0x76   :  { %383 = vmatpush1.bf16.msra.mxu1 %v591_v37 }
 0x10f   :  { %v137_v45 = vpop.f32.mrb[0].mxu0 }
 0x110   :  { %v138_v46 = vadd.f32 %v137_v45, %v77_v43  ;;  %v139_v47 = vpop.f32.mrb[1].mxu0 }
 0x111   :  { %v140_v48 = vadd.f32 %v139_v47, %v81_v44  ;;  %v141_v49 = vpop.f32.mrb[2].mxu0 }
 0x112   :  { %v144_v50 = vmax.f32 %v138_v46, 0.0  ;;  %v142_v51 = vpop.f32.mrb[3].mxu0 }
 0x113   :  { %v145_v52 = vmax.f32 %v140_v48, 0.0 }
 0x114   :  { %v146_v54 = vpack.c.bf16 %v144_v50, %v144_v50 }
 0x115   :  { %v147_v53 = vpack.c.bf16 %v145_v52, %v145_v52 }
 0x117   :  { %384 = vmatprep.mubr.bf16.mxu1 %v147_v53 }
 0x118   :  { %385 = vmatmul.mubr.bf16.vlgmr.msra.gmra.mrb[0].mxu1 %v146_v54 }
 0x1eb   :  { %v386_v62 = vpop.f32.mrb[0].mxu1 }
 0x1ec   :  { %v387_v63 = vadd.f32 %v386_v62, %v185_v60  ;;  %v388_v0 = vpop.f32.mrb[1].mxu1 }
 0x1ed   :  { %v389_v1 = vadd.f32 %v388_v0, %v189_v61  ;;  %v390_v2 = vpop.f32.mrb[2].mxu1 }
 0x1ee   :  { %v391_v3 = vpop.f32.mrb[3].mxu1  ;;  %v393_v5 = vmax.f32 %v387_v63, 0.0 }
 0x1ef   :  { %v394_v4 = vmax.f32 %v389_v1, 0.0 }
 0x1f1   :  { %410 = vmatprep.subr.mxu0 %v394_v4 }
 0x1f2   :  { %411 = vmatpush1.xpose.msra.mxu0 %v393_v5 }
 0x1f5   :  { %475 = vmatmul.mubr.f32.vlgmr.msra.gmra.mrb[4].mxu0 %v403_v6 }
 0x2c8   :  { %v476_v8 = vpop.f32.mrb[4].mxu0 }
 0x2c9   :  { %v477_v9 = vadd.f32 %v476_v8, %v398_v7  ;;  %v478_v10 = vpop.f32.mrb[5].mxu0 }
 0x2cb   :  { %481 = vst.msk [vmem:[#allocation9] sm:$0x1] %vm480_vm2, %v477_v9 }
 0x2cc   :  { %669 = shalt.err (!%p666_p0)
}
 0x2cd   :  { %s670_s6 = scalar_lea.hbm %s806_s7, 16 }
 0x2ce   :  { %p671_p1 = scmp.ne.s32.totalorder %s806_s7, %s670_s6  ;;  %p674_p2 = scmp.lt.u32.totalorder %s670_s6, %s806_s7 }
 0x2d0   :  { %p676_p3 = pnand %p674_p2, %p671_p1 }
 0x2d2   :  { %679 = shalt.err (!%p676_p3)
}
 0x2d3   :  { %491 = dma.vmem_to_hbm [thread:$0]  %s489_s4, 16, %s806_s7, [#allocation5]  }
 0x2d4   :  { %684 = dma.done.wait [#allocation5], 16  }
 0x2d5   :  { %685 = vsyncadd [#allocation5], 4294967280 }
 0x2d6   :  { %495 = vsyncpa [#allocation4], 1 }
 0x2d7   :  { %496 = vsyncpa [#allocation7], 1 }
 0x2d8   :  { %497 = vsyncpa [#allocation5], 1 }

</bundles_post_ra>
